<compile_context>
chip_gen: v5e
topology: v5e:2x2
jax: 0.10.0
libtpu: 0.0.40
codegen_flags: <defaults>
</compile_context>

<pallas_src>
import functools

import jax
import jax.numpy as jnp
from jax.experimental import pallas as pl
from jax.experimental.pallas import tpu as pltpu


LANE = 128                     # TPU lane width: pad all feature dims to this.
MAX_RESIDENT_BYTES = 12 << 20  # keep resident weights well under scoped VMEM
                               # defaults (16 MiB v5e / 32 MiB v6e,v7x).


def _round_up(n, m):
    return ((n + m - 1) // m) * m


# -----------------------------------------------------------------------------
# Fused kernel: one M-tile of the batch through the entire MLP, all weights
# resident in VMEM.
# -----------------------------------------------------------------------------
def _ffnn_fused_kernel(*refs, num_linear, scalar_dir):
    # refs = [x, direction, w0, b0, w1, b1, ..., w_{L-1}, b_{L-1}, out]
    x_ref = refs[0]
    dir_ref = refs[1]
    wb = refs[2:2 + 2 * num_linear]
    o_ref = refs[2 + 2 * num_linear]

    h = x_ref[...]                                   # bf16 (TM, 128*) padded
    for i in range(num_linear):
        w = wb[2 * i][...]                           # bf16 (K_p, N_p)
        b = wb[2 * i + 1][...]                       # f32  (1,  N_p)
        y = jnp.dot(h, w, preferred_element_type=jnp.float32) + b
        if i < num_linear - 1:
            # LeakyReLU (PyTorch default negative_slope = 0.01). Padded lanes
            # stay exactly zero (LeakyReLU(0) == 0, padded bias lanes == 0),
            # so padding is inert across layers.
            y = jnp.where(y >= 0.0, y, 0.01 * y)
            h = y.astype(jnp.bfloat16)               # bf16 operands for MXU
        else:
            h = y                                    # final layer stays f32

    if scalar_dir:
        d = dir_ref[0, 0]                            # SMEM scalar (+1 / -1)
    else:
        d = dir_ref[...]                             # (TM, 1) f32, lane bcast
    o_ref[...] = (h * d).astype(o_ref.dtype)


# -----------------------------------------------------------------------------
# Parameter construction (PyTorch convention) + one-time TPU preparation.
# -----------------------------------------------------------------------------
def init_ffnn_params(key, in_features, out_features, hparams):
    """Linear weights in PyTorch convention: weight (out, in), bias (out,)."""
    num_hidden = in_features * hparams.num_hidden_multiplier
    dims = [in_features] + [num_hidden] * (hparams.num_layers + 1) + [out_features]
    params = []
    keys = jax.random.split(key, len(dims) - 1)
    for i, k in enumerate(keys):
        fan_in, fan_out = dims[i], dims[i + 1]
        bound = 1.0 / (fan_in ** 0.5)
        kw, kb = jax.random.split(k)
        W = jax.random.uniform(kw, (fan_out, fan_in), jnp.float32, -bound, bound)
        b = jax.random.uniform(kb, (fan_out,), jnp.float32, -bound, bound)
        params.append({"weight": W, "bias": b})
    return params


def prepare_ffnn_params(params_torch):
    """One-time (outside jit): transpose to (in, out), zero-pad every feature
    dim up to 128 lanes, cast weights to bf16 for the MXU. Biases stay f32.

    IMPORTANT: padding correctness relies on padded bias lanes being exactly
    zero and on the activation satisfying act(0) == 0 (true for LeakyReLU);
    do not initialize padded lanes with anything else.
    """
    weights, biases = [], []
    for layer in params_torch:
        W = layer["weight"]                   # (out, in)
        b = layer["bias"]                     # (out,)
        n_out, n_in = W.shape
        k_p = max(_round_up(n_in, LANE), LANE)
        n_p = max(_round_up(n_out, LANE), LANE)
        Wt = jnp.zeros((k_p, n_p), jnp.float32).at[:n_in, :n_out].set(W.T)
        bt = jnp.zeros((1, n_p), jnp.float32).at[0, :n_out].set(b)
        weights.append(Wt.astype(jnp.bfloat16))
        biases.append(bt)

    resident = sum(int(w.size) * 2 for w in weights) + sum(
        int(b.size) * 4 for b in biases
    )
    # TODO(synk): if the model grows past this, stream weights from HBM with a
    # K/N-tiled grid (pipeline_mode=pl.Buffered(2..3)) instead of full VMEM
    # residency (break-even is 2x lower on v7x than on v5e/v6e).
    assert resident <= MAX_RESIDENT_BYTES, (
        f"resident params {resident} B exceed VMEM budget {MAX_RESIDENT_BYTES} B"
    )
    return {"weights": tuple(weights), "biases": tuple(biases)}


# -----------------------------------------------------------------------------
# Forward wrapper (jit-able). out_features is static (bound via partial).
# -----------------------------------------------------------------------------
def ffnn_forward_pallas(prepared, x, direction=1.0, *, out_features):
    weights = prepared["weights"]             # tuple of bf16 (K_p, N_p)
    biases = prepared["biases"]               # tuple of f32  (1,  N_p)
    num_linear = len(weights)

    B, F = x.shape
    f_p = weights[0].shape[0]
    out_p = weights[-1].shape[1]

    # --- M-tiling over the batch -------------------------------------------
    b8 = max(_round_up(B, 8), 8)
    TM = 128 if b8 >= 128 else b8             # sublane-aligned M tile
    B_pad = _round_up(B, TM)
    grid = (B_pad // TM,)

    # Lane-pad + bf16-cast the input once.
    x_p = jnp.pad(x.astype(jnp.bfloat16), ((0, B_pad - B), (0, f_p - F)))

    # --- integration_direction normalization --------------------------------
    d = jnp.asarray(direction, jnp.float32)
    scalar_dir = (d.ndim == 0) or (d.size == 1)   # scalar / (1,1,1)-like
    if scalar_dir:
        d_op = d.reshape(1, 1)                                        # SMEM
        dir_spec = pl.BlockSpec(
            (1, 1), lambda i: (0, 0), memory_space=pltpu.MemorySpace.SMEM
        )
    else:
        d_col = jnp.broadcast_to(d.reshape(d.shape[0], -1)[:, :1], (B, 1))
        d_op = jnp.pad(d_col, ((0, B_pad - B), (0, 0)))               # (B_pad,1)
        dir_spec = pl.BlockSpec((TM, 1), lambda i: (i, 0))

    operands = [x_p, d_op]
    in_specs = [pl.BlockSpec((TM, f_p), lambda i: (i, 0)), dir_spec]
    for w, b in zip(weights, biases):
        operands += [w, b]
        # Weights/biases: constant block index -> stay VMEM-resident across
        # the whole grid (no re-DMA per M tile).
        in_specs += [
            pl.BlockSpec(w.shape, lambda i: (0, 0)),
            pl.BlockSpec(b.shape, lambda i: (0, 0)),
        ]

    flops = 2 * B_pad * sum(w.shape[0] * w.shape[1] for w in weights)
    bytes_accessed = (
        x_p.size * 2 + d_op.size * 4
        + sum(w.size * 2 for w in weights)
        + sum(b.size * 4 for b in biases)
        + B_pad * out_p * 4
    )

    out_arr = pl.pallas_call(
        functools.partial(
            _ffnn_fused_kernel, num_linear=num_linear, scalar_dir=scalar_dir
        ),
        out_shape=jax.ShapeDtypeStruct((B_pad, out_p), jnp.float32),
        grid=grid,
        in_specs=in_specs,
        out_specs=pl.BlockSpec((TM, out_p), lambda i: (i, 0)),
        compiler_params=pltpu.CompilerParams(
            dimension_semantics=("parallel",)
        ),
        cost_estimate=pl.CostEstimate(
            flops=flops, transcendentals=0, bytes_accessed=bytes_accessed
        ),
    )(*operands)

    return out_arr[:B, :out_features]


# -----------------------------------------------------------------------------
# Pure-JAX reference (f32) for correctness checking.
# -----------------------------------------------------------------------------
def ffnn_reference(params_torch, x, direction=1.0):
    h = x
    n = len(params_torch)
    for i, layer in enumerate(params_torch):
        h = h @ layer["weight"].T + layer["bias"]
        if i < n - 1:
            h = jnp.where(h >= 0.0, h, 0.01 * h)
    d = jnp.asarray(direction, jnp.float32)
    if d.ndim == 3:
        d = d.reshape(d.shape[0], 1)
    return d * h


if __name__ == "__main__":
    class HParams:
        num_hidden_multiplier = 4
        num_layers = 2

    hp = HParams()
    in_features = 8
    out_features = in_features            # module default: out = in
    # num_hidden = 8 * 4 = 32; layers: 8->32, 32->32, 32->32, 32->8

    key = jax.random.PRNGKey(0)
    kp, kx1, kx2 = jax.random.split(key, 3)

    params_torch = init_ffnn_params(kp, in_features, out_features, hp)
    prepared = prepare_ffnn_params(params_torch)

    fwd = jax.jit(
        functools.partial(ffnn_forward_pallas, out_features=out_features)
    )

    # Case 1: many states in one call (amortizes launch overhead; M-tile grid
    # of 2 x (128,128) tiles, parallel across TCs on v7x), scalar direction.
    B1 = 256
    x1 = jax.random.normal(kx1, (B1, in_features), jnp.float32)
    dx1 = fwd(prepared, x1, 1.0)
    jax.block_until_ready(dx1)
    assert dx1.shape == (B1, out_features), dx1.shape
    ref1 = ffnn_reference(params_torch, x1, 1.0)
    assert jnp.allclose(dx1, ref1, rtol=5e-2, atol=5e-2), float(
        jnp.max(jnp.abs(dx1 - ref1))
    )

    # Case 2: per-sample integration_direction of shape (BS, 1, 1), values ±1,
    # batch not a multiple of the M tile (exercises the padding path).
    B2 = 200
    x2 = jax.random.normal(kx2, (B2, in_features), jnp.float32)
    dirs = jnp.where(jnp.arange(B2) % 2 == 0, 1.0, -1.0).reshape(B2, 1, 1)
    dx2 = fwd(prepared, x2, dirs)
    jax.block_until_ready(dx2)
    assert dx2.shape == (B2, out_features), dx2.shape
    ref2 = ffnn_reference(params_torch, x2, dirs)
    assert jnp.allclose(dx2, ref2, rtol=5e-2, atol=5e-2), float(
        jnp.max(jnp.abs(dx2 - ref2))
    )

    # Case 3: tiny batch, direction = -1 scalar (grid collapses to one tile).
    B3 = 8
    x3 = x1[:B3]
    dx3 = fwd(prepared, x3, -1.0)
    jax.block_until_ready(dx3)
    ref3 = ffnn_reference(params_torch, x3, -1.0)
    assert jnp.allclose(dx3, ref3, rtol=5e-2, atol=5e-2), float(
        jnp.max(jnp.abs(dx3 - ref3))
    )

    print("KERNEL_OK")
</pallas_src>

<mosaic_0001>
module attributes {stable_mosaic.version = 11 : i64} {
  func.func @_ffnn_fused_kernel(%arg0: i32, %arg1: memref<128x128xbf16, #tpu.memory_space<vmem>>, %arg2: memref<1x1xf32, #tpu.memory_space<smem>>, %arg3: memref<128x128xbf16, #tpu.memory_space<vmem>>, %arg4: memref<1x128xf32, #tpu.memory_space<vmem>>, %arg5: memref<128x128xbf16, #tpu.memory_space<vmem>>, %arg6: memref<1x128xf32, #tpu.memory_space<vmem>>, %arg7: memref<128x128xbf16, #tpu.memory_space<vmem>>, %arg8: memref<1x128xf32, #tpu.memory_space<vmem>>, %arg9: memref<128x128xbf16, #tpu.memory_space<vmem>>, %arg10: memref<1x128xf32, #tpu.memory_space<vmem>>, %arg11: memref<128x128xf32, #tpu.memory_space<vmem>>) attributes {dimension_semantics = [#tpu.dimension_semantics<parallel>], iteration_bounds = array<i64: 2>, scalar_prefetch = 0 : i64, scratch_operands = 0 : i64, tpu.core_type = #tpu.core_type<tc>, window_params = [{transform_indices = @transform_0, window_bounds = array<i64: 128, 128>}, {transform_indices = @transform_1, window_bounds = array<i64: 1, 1>}, {pipeline_mode = #tpu.pipeline_mode<synchronous>, transform_indices = @transform_2, window_bounds = array<i64: 128, 128>}, {pipeline_mode = #tpu.pipeline_mode<synchronous>, transform_indices = @transform_3, window_bounds = array<i64: 1, 128>}, {pipeline_mode = #tpu.pipeline_mode<synchronous>, transform_indices = @transform_4, window_bounds = array<i64: 128, 128>}, {pipeline_mode = #tpu.pipeline_mode<synchronous>, transform_indices = @transform_5, window_bounds = array<i64: 1, 128>}, {pipeline_mode = #tpu.pipeline_mode<synchronous>, transform_indices = @transform_6, window_bounds = array<i64: 128, 128>}, {pipeline_mode = #tpu.pipeline_mode<synchronous>, transform_indices = @transform_7, window_bounds = array<i64: 1, 128>}, {pipeline_mode = #tpu.pipeline_mode<synchronous>, transform_indices = @transform_8, window_bounds = array<i64: 128, 128>}, {pipeline_mode = #tpu.pipeline_mode<synchronous>, transform_indices = @transform_9, window_bounds = array<i64: 1, 128>}, {transform_indices = @transform_10, window_bounds = array<i64: 128, 128>}]} {
    %c0 = arith.constant 0 : index
    %c0_0 = arith.constant 0 : index
    %0 = vector.load %arg1[%c0, %c0_0] : memref<128x128xbf16, #tpu.memory_space<vmem>>, vector<128x128xbf16>
    %c0_1 = arith.constant 0 : index
    %c0_2 = arith.constant 0 : index
    %1 = vector.load %arg3[%c0_1, %c0_2] : memref<128x128xbf16, #tpu.memory_space<vmem>>, vector<128x128xbf16>
    %c0_3 = arith.constant 0 : index
    %c0_4 = arith.constant 0 : index
    %2 = vector.load %arg4[%c0_3, %c0_4] : memref<1x128xf32, #tpu.memory_space<vmem>>, vector<1x128xf32>
    %cst = arith.constant dense<0.000000e+00> : vector<128x128xf32>
    %3 = tpu.matmul %0, %1, %cst {dimension_numbers = #tpu.dot_dimension_numbers<[1], [0], [0], [1], [0, 0, 1, 1], [], []>} : vector<128x128xbf16>, vector<128x128xbf16>, vector<128x128xf32> -> vector<128x128xf32>
    %4 = vector.broadcast %2 : vector<1x128xf32> to vector<128x128xf32>
    %5 = arith.addf %3, %4 : vector<128x128xf32>
    %cst_5 = arith.constant 0.000000e+00 : f32
    %6 = vector.broadcast %cst_5 : f32 to vector<128x128xf32>
    %7 = arith.cmpf oge, %5, %6 : vector<128x128xf32>
    %cst_6 = arith.constant 0.00999999977 : f32
    %8 = vector.broadcast %cst_6 : f32 to vector<128x128xf32>
    %9 = arith.mulf %8, %5 : vector<128x128xf32>
    %10 = arith.select %7, %5, %9 : vector<128x128xi1>, vector<128x128xf32>
    %11 = arith.truncf %10 : vector<128x128xf32> to vector<128x128xbf16>
    %c0_7 = arith.constant 0 : index
    %c0_8 = arith.constant 0 : index
    %12 = vector.load %arg5[%c0_7, %c0_8] : memref<128x128xbf16, #tpu.memory_space<vmem>>, vector<128x128xbf16>
    %c0_9 = arith.constant 0 : index
    %c0_10 = arith.constant 0 : index
    %13 = vector.load %arg6[%c0_9, %c0_10] : memref<1x128xf32, #tpu.memory_space<vmem>>, vector<1x128xf32>
    %cst_11 = arith.constant dense<0.000000e+00> : vector<128x128xf32>
    %14 = tpu.matmul %11, %12, %cst_11 {dimension_numbers = #tpu.dot_dimension_numbers<[1], [0], [0], [1], [0, 0, 1, 1], [], []>} : vector<128x128xbf16>, vector<128x128xbf16>, vector<128x128xf32> -> vector<128x128xf32>
    %15 = vector.broadcast %13 : vector<1x128xf32> to vector<128x128xf32>
    %16 = arith.addf %14, %15 : vector<128x128xf32>
    %cst_12 = arith.constant 0.000000e+00 : f32
    %17 = vector.broadcast %cst_12 : f32 to vector<128x128xf32>
    %18 = arith.cmpf oge, %16, %17 : vector<128x128xf32>
    %cst_13 = arith.constant 0.00999999977 : f32
    %19 = vector.broadcast %cst_13 : f32 to vector<128x128xf32>
    %20 = arith.mulf %19, %16 : vector<128x128xf32>
    %21 = arith.select %18, %16, %20 : vector<128x128xi1>, vector<128x128xf32>
    %22 = arith.truncf %21 : vector<128x128xf32> to vector<128x128xbf16>
    %c0_14 = arith.constant 0 : index
    %c0_15 = arith.constant 0 : index
    %23 = vector.load %arg7[%c0_14, %c0_15] : memref<128x128xbf16, #tpu.memory_space<vmem>>, vector<128x128xbf16>
    %c0_16 = arith.constant 0 : index
    %c0_17 = arith.constant 0 : index
    %24 = vector.load %arg8[%c0_16, %c0_17] : memref<1x128xf32, #tpu.memory_space<vmem>>, vector<1x128xf32>
    %cst_18 = arith.constant dense<0.000000e+00> : vector<128x128xf32>
    %25 = tpu.matmul %22, %23, %cst_18 {dimension_numbers = #tpu.dot_dimension_numbers<[1], [0], [0], [1], [0, 0, 1, 1], [], []>} : vector<128x128xbf16>, vector<128x128xbf16>, vector<128x128xf32> -> vector<128x128xf32>
    %26 = vector.broadcast %24 : vector<1x128xf32> to vector<128x128xf32>
    %27 = arith.addf %25, %26 : vector<128x128xf32>
    %cst_19 = arith.constant 0.000000e+00 : f32
    %28 = vector.broadcast %cst_19 : f32 to vector<128x128xf32>
    %29 = arith.cmpf oge, %27, %28 : vector<128x128xf32>
    %cst_20 = arith.constant 0.00999999977 : f32
    %30 = vector.broadcast %cst_20 : f32 to vector<128x128xf32>
    %31 = arith.mulf %30, %27 : vector<128x128xf32>
    %32 = arith.select %29, %27, %31 : vector<128x128xi1>, vector<128x128xf32>
    %33 = arith.truncf %32 : vector<128x128xf32> to vector<128x128xbf16>
    %c0_21 = arith.constant 0 : index
    %c0_22 = arith.constant 0 : index
    %34 = vector.load %arg9[%c0_21, %c0_22] : memref<128x128xbf16, #tpu.memory_space<vmem>>, vector<128x128xbf16>
    %c0_23 = arith.constant 0 : index
    %c0_24 = arith.constant 0 : index
    %35 = vector.load %arg10[%c0_23, %c0_24] : memref<1x128xf32, #tpu.memory_space<vmem>>, vector<1x128xf32>
    %cst_25 = arith.constant dense<0.000000e+00> : vector<128x128xf32>
    %36 = tpu.matmul %33, %34, %cst_25 {dimension_numbers = #tpu.dot_dimension_numbers<[1], [0], [0], [1], [0, 0, 1, 1], [], []>} : vector<128x128xbf16>, vector<128x128xbf16>, vector<128x128xf32> -> vector<128x128xf32>
    %37 = vector.broadcast %35 : vector<1x128xf32> to vector<128x128xf32>
    %38 = arith.addf %36, %37 : vector<128x128xf32>
    %c0_26 = arith.constant 0 : index
    %c0_27 = arith.constant 0 : index
    %39 = memref.load %arg2[%c0_26, %c0_27] : memref<1x1xf32, #tpu.memory_space<smem>>
    %40 = vector.broadcast %39 : f32 to vector<128x128xf32>
    %41 = arith.mulf %38, %40 : vector<128x128xf32>
    %c0_28 = arith.constant 0 : index
    %c0_29 = arith.constant 0 : index
    %42 = vector.load %arg11[%c0_28, %c0_29] : memref<128x128xf32, #tpu.memory_space<vmem>>, vector<128x128xf32>
    tpu.vector_store %arg11[%c0_28, %c0_29], %41 {strides = array<i32>} : memref<128x128xf32, #tpu.memory_space<vmem>>, vector<128x128xf32>,
    return
  }
  func.func @transform_0(%arg0: i32) -> (i32, i32) {
    %c0_i32 = arith.constant 0 : i32
    %c0_i32_0 = arith.constant 0 : i32
    return %arg0, %c0_i32 : i32, i32
  }
  func.func @transform_1(%arg0: i32) -> (i32, i32) {
    %c0_i32 = arith.constant 0 : i32
    %c0_i32_0 = arith.constant 0 : i32
    %c0_i32_1 = arith.constant 0 : i32
    return %c0_i32, %c0_i32_0 : i32, i32
  }
  func.func @transform_2(%arg0: i32) -> (i32, i32) {
    %c0_i32 = arith.constant 0 : i32
    %c0_i32_0 = arith.constant 0 : i32
    %c0_i32_1 = arith.constant 0 : i32
    return %c0_i32, %c0_i32_0 : i32, i32
  }
  func.func @transform_3(%arg0: i32) -> (i32, i32) {
    %c0_i32 = arith.constant 0 : i32
    %c0_i32_0 = arith.constant 0 : i32
    %c0_i32_1 = arith.constant 0 : i32
    return %c0_i32, %c0_i32_0 : i32, i32
  }
  func.func @transform_4(%arg0: i32) -> (i32, i32) {
    %c0_i32 = arith.constant 0 : i32
    %c0_i32_0 = arith.constant 0 : i32
    %c0_i32_1 = arith.constant 0 : i32
    return %c0_i32, %c0_i32_0 : i32, i32
  }
  func.func @transform_5(%arg0: i32) -> (i32, i32) {
    %c0_i32 = arith.constant 0 : i32
    %c0_i32_0 = arith.constant 0 : i32
    %c0_i32_1 = arith.constant 0 : i32
    return %c0_i32, %c0_i32_0 : i32, i32
  }
  func.func @transform_6(%arg0: i32) -> (i32, i32) {
    %c0_i32 = arith.constant 0 : i32
    %c0_i32_0 = arith.constant 0 : i32
    %c0_i32_1 = arith.constant 0 : i32
    return %c0_i32, %c0_i32_0 : i32, i32
  }
  func.func @transform_7(%arg0: i32) -> (i32, i32) {
    %c0_i32 = arith.constant 0 : i32
    %c0_i32_0 = arith.constant 0 : i32
    %c0_i32_1 = arith.constant 0 : i32
    return %c0_i32, %c0_i32_0 : i32, i32
  }
  func.func @transform_8(%arg0: i32) -> (i32, i32) {
    %c0_i32 = arith.constant 0 : i32
    %c0_i32_0 = arith.constant 0 : i32
    %c0_i32_1 = arith.constant 0 : i32
    return %c0_i32, %c0_i32_0 : i32, i32
  }
  func.func @transform_9(%arg0: i32) -> (i32, i32) {
    %c0_i32 = arith.constant 0 : i32
    %c0_i32_0 = arith.constant 0 : i32
    %c0_i32_1 = arith.constant 0 : i32
    return %c0_i32, %c0_i32_0 : i32, i32
  }
  func.func @transform_10(%arg0: i32) -> (i32, i32) {
    %c0_i32 = arith.constant 0 : i32
    %c0_i32_0 = arith.constant 0 : i32
    return %arg0, %c0_i32 : i32, i32
  }
}

</mosaic_0001>

<bundles_post_ra>
// kernel: ffnn_forward_pallas.1
= control target key start
LH: loop header
LB: loop body
LE: loop exit
PB: predicated region body
PF: predicated region fallthrough
CT: control target
= control target key end

     0   :  { %s1443_s15 = smov 0   ;;  %s1690_s0 = inlined_call_operand.vmem [shape: bf16[256,128], index: 0, kind: input, shape index: {}]   ;;  %s1691_s1 = inlined_call_operand.<no memory space> [shape: f32[1,1], index: 1, kind: input, shape index: {}]   ;;  %s1692_s2 = inlined_call_operand.vmem [shape: bf16[128,128], index: 2, kind: input, shape index: {}]   ;;  %s1693_s3 = inlined_call_operand.vmem [shape: f32[1,128], index: 3, kind: input, shape index: {}]   ;;  %s1694_s4 = inlined_call_operand.vmem [shape: bf16[128,128], index: 4, kind: input, shape index: {}]   ;;  %s1695_s5 = inlined_call_operand.vmem [shape: f32[1,128], index: 5, kind: input, shape index: {}]   ;;  %s1696_s6 = inlined_call_operand.vmem [shape: bf16[128,128], index: 6, kind: input, shape index: {}]   ;;  %s1697_s7 = inlined_call_operand.vmem [shape: f32[1,128], index: 7, kind: input, shape index: {}]   ;;  %s1698_s8 = inlined_call_operand.vmem [shape: bf16[128,128], index: 8, kind: input, shape index: {}]   ;;  %s1699_s9 = inlined_call_operand.vmem [shape: f32[1,128], index: 9, kind: input, shape index: {}]   ;;  %s1700_s10 = inlined_call_operand.vmem [shape: f32[256,128], index: 10, kind: output, shape index: {}]  }
   0x1   :  { %15 = sst [smem:[#allocation2]] %s1691_s1 }
   0x2 LB: > { %s1154_s16 = sadd.s32 4294967295, %s1383_s15   ;;  %p1158_p0 = scmp.ge.s32.totalorder %s1383_s15, 1  ;;  %s1383_s15 = sphi %s1443_s15, %s21_s15  }
   0x3   : > { %p314_p1 = scmp.lt.s32.totalorder %s1383_s15, 3 }
   0x5   : > { %p315_p2 = pnand %p1158_p0, %p314_p1 }
   0x6   : > { %s1159_s24 = sshll.u32 (!%p315_p2), %s1154_s16, 4  ;;  %s1064_s14 = sld [smem:[#allocation2]] (!%p315_p2) }
   0x7   : > { %318 = sbr.rel (%p315_p2) target bundleno = 730 (0x2da), region = 60  ;;  %p353_p3 = scmp.lt.s32.totalorder (!%p315_p2), %s1159_s24, 31 }
   0xc   : > { %v1340_v0 = vld [vmem:[%s1692_s2 + $0x38] sm:$0xff]  ;;  %v1339_v1 = vld [vmem:[%s1692_s2 + $0x30] sm:$0xff]  ;;  %v1338_v2 = vld [vmem:[%s1692_s2 + $0x28] sm:$0xff]  ;;  %s1702_s24 = smov (!%p353_p3, %s1159_s24), 31 }
   0xd   : > { %496 = vmatpush.bf16.msra.mxu0 %v1340_v0  ;;  %v1337_v3 = vld [vmem:[%s1692_s2 + $0x20] sm:$0xff]  ;;  %v1336_v4 = vld [vmem:[%s1692_s2 + $0x18] sm:$0xff]  ;;  %v1335_v5 = vld [vmem:[%s1692_s2 + $0x10] sm:$0xff]  ;;  %s1160_s11 = sshll.u32 %s1702_s24, 2  ;;  %s1162_s18 = sshll.u32 %s1702_s24, 3 }
   0xe   : > { %v1334_v6 = vld [vmem:[%s1692_s2 + $0x8] sm:$0xff]  ;;  %v1333_v7 = vld [vmem:[%s1692_s2] sm:$0xff]  ;;  %s1481_s17 = scalar_lea.vmem %s1690_s0, %s1160_s11  ;;  %v1348_v13 = vld [vmem:[%s1694_s4 + $0x38] sm:$0xff]  ;;  %s1638_s20 = scalar_lea.vmem %s1700_s10, %s1162_s18 }
   0xf   : > { %v1325_v8 = vld [vmem:[%s1481_s17] sm:$0xff]  ;;  %v1326_v9 = vld [vmem:[%s1481_s17 + $0x8] sm:$0xff]  ;;  %v1327_v10 = vld [vmem:[%s1481_s17 + $0x10] sm:$0xff]  ;;  %669 = vmatpush.bf16.msra.mxu1 %v1348_v13 }
  0x10   : > { %v1328_v11 = vld [vmem:[%s1481_s17 + $0x18] sm:$0xff]  ;;  %v1329_v12 = vld [vmem:[%s1481_s17 + $0x20] sm:$0xff]  ;;  %v1330_v14 = vld [vmem:[%s1481_s17 + $0x28] sm:$0xff] }
  0x11   : > { %497 = vmatpush.bf16.msra.mxu0 %v1339_v1  ;;  %v1347_v15 = vld [vmem:[%s1694_s4 + $0x30] sm:$0xff]  ;;  %v1346_v16 = vld [vmem:[%s1694_s4 + $0x28] sm:$0xff]  ;;  %v1345_v17 = vld [vmem:[%s1694_s4 + $0x20] sm:$0xff] }
  0x12   : > { %v1331_v18 = vld [vmem:[%s1481_s17 + $0x30] sm:$0xff]  ;;  %v1344_v19 = vld [vmem:[%s1694_s4 + $0x18] sm:$0xff]  ;;  %v1342_v21 = vld [vmem:[%s1694_s4 + $0x8] sm:$0xff] }
  0x13   : > { %670 = vmatpush.bf16.msra.mxu1 %v1347_v15  ;;  %v1343_v20 = vld [vmem:[%s1694_s4 + $0x10] sm:$0xff]  ;;  %v1341_v22 = vld [vmem:[%s1694_s4] sm:$0xff]  ;;  %v1332_v23 = vld [vmem:[%s1481_s17 + $0x38] sm:$0xff] }
  0x14   : > { %v1518_v25 = vld [vmem:[%s1693_s3] ss:$0 sm:$0xff] }
  0x15   : > { %498 = vmatpush.bf16.msra.mxu0 %v1338_v2 }
  0x17   : > { %671 = vmatpush.bf16.msra.mxu1 %v1346_v16 }
  0x19   : > { %499 = vmatpush.bf16.msra.mxu0 %v1337_v3 }
  0x1b   : > { %672 = vmatpush.bf16.msra.mxu1 %v1345_v17  ;;  %v1355_v17 = vld [vmem:[%s1696_s6 + $0x30] sm:$0xff] }
  0x1d   : > { %500 = vmatpush.bf16.msra.mxu0 %v1336_v4 }
  0x1f   : > { %673 = vmatpush.bf16.msra.mxu1 %v1344_v19 }
  0x21   : > { %501 = vmatpush.bf16.msra.mxu0 %v1335_v5 }
  0x23   : > { %674 = vmatpush.bf16.msra.mxu1 %v1343_v20  ;;  %v1353_v20 = vld [vmem:[%s1696_s6 + $0x20] sm:$0xff] }
  0x25   : > { %502 = vmatpush.bf16.msra.mxu0 %v1334_v6 }
  0x27   : > { %675 = vmatpush.bf16.msra.mxu1 %v1342_v21 }
  0x29   : > { %503 = vmatpush.bf16.msra.mxu0 %v1333_v7 }
  0x2b   : > { %676 = vmatpush.bf16.msra.mxu1 %v1341_v22 }
  0x2c   : > { %504 = vmatmul.bf16.vlgmr.msra.gmra.mxu0 %v1325_v8 }
  0x3c   : > { %509 = vmatmul.bf16.gmra.mxu0 %v1326_v9 }
  0x4c   : > { %514 = vmatmul.bf16.gmra.mxu0 %v1327_v10 }
  0x5c   : > { %519 = vmatmul.bf16.gmra.mxu0 %v1328_v11 }
  0x6c   : > { %524 = vmatmul.bf16.gmra.mxu0 %v1329_v12  ;;  %v1356_v12 = vld [vmem:[%s1696_s6 + $0x38] sm:$0xff] }
  0x6d   : > { %842 = vmatpush.bf16.msra.mxu2 %v1356_v12 }
  0x71   : > { %843 = vmatpush.bf16.msra.mxu2 %v1355_v17 }
  0x7c   : > { %529 = vmatmul.bf16.gmra.mxu0 %v1330_v14 }
  0x8c   : > { %534 = vmatmul.bf16.gmra.mxu0 %v1331_v18  ;;  %v1354_v18 = vld [vmem:[%s1696_s6 + $0x28] sm:$0xff] }
  0x8d   : > { %844 = vmatpush.bf16.msra.mxu2 %v1354_v18 }
  0x91   : > { %845 = vmatpush.bf16.msra.mxu2 %v1353_v20 }
  0x9c   : > { %539 = vmatmul.bf16.gmra.mxu0 %v1332_v23 }
  0xa9   : > { %v505_v24 = vpop.f32.mrf.mxu0 }
  0xaa   : > { %v506_v26 = vadd.f32 %v1518_v25, %v505_v24 }
  0xac   : > { %v561_v28 = vmul.f32 0.01, %v506_v26  ;;  %vm545_vm0 = vcmp.ge.f32.partialorder %v506_v26, 0.0 }
  0xae   : > { %v577_v31 = vsel %vm545_vm0, %v506_v26, %v561_v28  ;;  %v1352_v26 = vld [vmem:[%s1696_s6 + $0x18] sm:$0xff] }
  0xaf   : > { %846 = vmatpush.bf16.msra.mxu2 %v1352_v26 }
  0xb1   : > { %v507_v27 = vpop.f32.mrf.mxu0 }
  0xb2   : > { %v508_v29 = vadd.f32 %v1518_v25, %v507_v27 }
  0xb4   : > { %v562_v30 = vmul.f32 0.01, %v508_v29  ;;  %vm546_vm1 = vcmp.ge.f32.partialorder %v508_v29, 0.0 }
  0xb6   : > { %v578_v32 = vsel %vm546_vm1, %v508_v29, %v562_v30 }
  0xb7   : > { %v593_v33 = vpack.c.bf16 %v578_v32, %v577_v31  ;;  %v1351_v31 = vld [vmem:[%s1696_s6 + $0x10] sm:$0xff]  ;;  %v1350_v32 = vld [vmem:[%s1696_s6 + $0x8] sm:$0xff] }
  0xb8   : > { %847 = vmatpush.bf16.msra.mxu2 %v1351_v31 }
  0xb9   : > { %v510_v34 = vpop.f32.mrf.mxu0  ;;  %677 = vmatmul.bf16.vlgmr.msra.gmra.mxu1 %v593_v33 }
  0xba   : > { %v511_v35 = vadd.f32 %v1518_v25, %v510_v34 }
  0xbc   : > { %v563_v37 = vmul.f32 0.01, %v511_v35  ;;  %vm547_vm2 = vcmp.ge.f32.partialorder %v511_v35, 0.0  ;;  %848 = vmatpush.bf16.msra.mxu2 %v1350_v32 }
  0xbe   : > { %v579_v40 = vsel %vm547_vm2, %v511_v35, %v563_v37  ;;  %v1349_v35 = vld [vmem:[%s1696_s6] sm:$0xff] }
  0xc0   : > { %849 = vmatpush.bf16.msra.mxu2 %v1349_v35  ;;  %v1363_v35 = vld [vmem:[%s1698_s8 + $0x30] sm:$0xff] }
  0xc1   : > { %v512_v36 = vpop.f32.mrf.mxu0 }
  0xc2   : > { %v513_v38 = vadd.f32 %v1518_v25, %v512_v36 }
  0xc4   : > { %v564_v39 = vmul.f32 0.01, %v513_v38  ;;  %vm548_vm3 = vcmp.ge.f32.partialorder %v513_v38, 0.0 }
  0xc6   : > { %v580_v41 = vsel %vm548_vm3, %v513_v38, %v564_v39 }
  0xc7   : > { %v594_v42 = vpack.c.bf16 %v580_v41, %v579_v40 }
  0xc9   : > { %v515_v43 = vpop.f32.mrf.mxu0  ;;  %682 = vmatmul.bf16.gmra.mxu1 %v594_v42 }
  0xca   : > { %v516_v44 = vadd.f32 %v1518_v25, %v515_v43  ;;  %v1563_v43 = vld [vmem:[%s1695_s5] ss:$0 sm:$0xff] }
  0xcc   : > { %v565_v46 = vmul.f32 0.01, %v516_v44  ;;  %vm549_vm4 = vcmp.ge.f32.partialorder %v516_v44, 0.0 }
  0xce   : > { %v581_v49 = vsel %vm549_vm4, %v516_v44, %v565_v46 }
  0xd1   : > { %v517_v45 = vpop.f32.mrf.mxu0 }
  0xd2   : > { %v518_v47 = vadd.f32 %v1518_v25, %v517_v45 }
  0xd4   : > { %v566_v48 = vmul.f32 0.01, %v518_v47  ;;  %vm550_vm5 = vcmp.ge.f32.partialorder %v518_v47, 0.0 }
  0xd6   : > { %v582_v50 = vsel %vm550_vm5, %v518_v47, %v566_v48 }
  0xd7   : > { %v595_v51 = vpack.c.bf16 %v582_v50, %v581_v49 }
  0xd9   : > { %v520_v52 = vpop.f32.mrf.mxu0  ;;  %687 = vmatmul.bf16.gmra.mxu1 %v595_v51 }
  0xda   : > { %v521_v53 = vadd.f32 %v1518_v25, %v520_v52 }
  0xdc   : > { %v567_v55 = vmul.f32 0.01, %v521_v53  ;;  %vm551_vm6 = vcmp.ge.f32.partialorder %v521_v53, 0.0 }
  0xde   : > { %v583_v58 = vsel %vm551_vm6, %v521_v53, %v567_v55 }
  0xe1   : > { %v522_v54 = vpop.f32.mrf.mxu0 }
  0xe2   : > { %v523_v56 = vadd.f32 %v1518_v25, %v522_v54 }
  0xe4   : > { %v568_v57 = vmul.f32 0.01, %v523_v56  ;;  %vm552_vm7 = vcmp.ge.f32.partialorder %v523_v56, 0.0 }
  0xe6   : > { %v584_v59 = vsel %vm552_vm7, %v523_v56, %v568_v57 }
  0xe7   : > { %v596_v60 = vpack.c.bf16 %v584_v59, %v583_v58 }
  0xe9   : > { %v525_v61 = vpop.f32.mrf.mxu0  ;;  %692 = vmatmul.bf16.gmra.mxu1 %v596_v60 }
  0xea   : > { %v526_v62 = vadd.f32 %v1518_v25, %v525_v61 }
  0xec   : > { %v569_v0 = vmul.f32 0.01, %v526_v62  ;;  %vm553_vm8 = vcmp.ge.f32.partialorder %v526_v62, 0.0 }
  0xee   : > { %v585_v3 = vsel %vm553_vm8, %v526_v62, %v569_v0 }
  0xf1   : > { %v527_v63 = vpop.f32.mrf.mxu0 }
  0xf2   : > { %v528_v1 = vadd.f32 %v1518_v25, %v527_v63 }
  0xf4   : > { %v570_v2 = vmul.f32 0.01, %v528_v1  ;;  %vm554_vm9 = vcmp.ge.f32.partialorder %v528_v1, 0.0 }
  0xf6   : > { %v586_v4 = vsel %vm554_vm9, %v528_v1, %v570_v2 }
  0xf7   : > { %v597_v5 = vpack.c.bf16 %v586_v4, %v585_v3 }
  0xf9   : > { %v530_v6 = vpop.f32.mrf.mxu0  ;;  %697 = vmatmul.bf16.gmra.mxu1 %v597_v5 }
  0xfa   : > { %v531_v7 = vadd.f32 %v1518_v25, %v530_v6 }
  0xfc   : > { %v571_v9 = vmul.f32 0.01, %v531_v7  ;;  %vm555_vm10 = vcmp.ge.f32.partialorder %v531_v7, 0.0 }
  0xfe   : > { %v587_v13 = vsel %vm555_vm10, %v531_v7, %v571_v9 }
 0x101   : > { %v532_v8 = vpop.f32.mrf.mxu0 }
 0x102   : > { %v533_v10 = vadd.f32 %v1518_v25, %v532_v8 }
 0x104   : > { %v572_v11 = vmul.f32 0.01, %v533_v10  ;;  %vm556_vm11 = vcmp.ge.f32.partialorder %v533_v10, 0.0 }
 0x106   : > { %v588_v14 = vsel %vm556_vm11, %v533_v10, %v572_v11 }
 0x107   : > { %v598_v15 = vpack.c.bf16 %v588_v14, %v587_v13 }
 0x109   : > { %v535_v16 = vpop.f32.mrf.mxu0  ;;  %702 = vmatmul.bf16.gmra.mxu1 %v598_v15 }
 0x10a   : > { %v536_v19 = vadd.f32 %v1518_v25, %v535_v16 }
 0x10c   : > { %v573_v22 = vmul.f32 0.01, %v536_v19  ;;  %vm557_vm12 = vcmp.ge.f32.partialorder %v536_v19, 0.0 }
 0x10e   : > { %v589_v27 = vsel %vm557_vm12, %v536_v19, %v573_v22 }
 0x111   : > { %v537_v21 = vpop.f32.mrf.mxu0 }
 0x112   : > { %v538_v23 = vadd.f32 %v1518_v25, %v537_v21 }
 0x114   : > { %v574_v24 = vmul.f32 0.01, %v538_v23  ;;  %vm558_vm13 = vcmp.ge.f32.partialorder %v538_v23, 0.0 }
 0x116   : > { %v590_v28 = vsel %vm558_vm13, %v538_v23, %v574_v24 }
 0x117   : > { %v599_v29 = vpack.c.bf16 %v590_v28, %v589_v27 }
 0x119   : > { %v540_v30 = vpop.f32.mrf.mxu0  ;;  %707 = vmatmul.bf16.gmra.mxu1 %v599_v29 }
 0x11a   : > { %v541_v33 = vadd.f32 %v1518_v25, %v540_v30 }
 0x11c   : > { %v575_v36 = vmul.f32 0.01, %v541_v33  ;;  %vm559_vm14 = vcmp.ge.f32.partialorder %v541_v33, 0.0 }
 0x11e   : > { %v591_v39 = vsel %vm559_vm14, %v541_v33, %v575_v36 }
 0x121   : > { %v542_v34 = vpop.f32.mrf.mxu0 }
 0x122   : > { %v543_v37 = vadd.f32 %v1518_v25, %v542_v34  ;;  %v1364_v34 = vld [vmem:[%s1698_s8 + $0x38] sm:$0xff] }
 0x123   : > { %1015 = vmatpush.bf16.msra.mxu3 %v1364_v34 }
 0x124   : > { %v576_v38 = vmul.f32 0.01, %v543_v37  ;;  %vm560_vm15 = vcmp.ge.f32.partialorder %v543_v37, 0.0 }
 0x126   : > { %v592_v40 = vsel %vm560_vm15, %v543_v37, %v576_v38  ;;  %v1362_v37 = vld [vmem:[%s1698_s8 + $0x28] sm:$0xff] }
 0x127   : > { %v600_v41 = vpack.c.bf16 %v592_v40, %v591_v39  ;;  %1016 = vmatpush.bf16.msra.mxu3 %v1363_v35 }
 0x129   : > { %712 = vmatmul.bf16.gmra.mxu1 %v600_v41  ;;  %v1361_v41 = vld [vmem:[%s1698_s8 + $0x20] sm:$0xff] }
 0x12b   : > { %1017 = vmatpush.bf16.msra.mxu3 %v1362_v37 }
 0x12f   : > { %1018 = vmatpush.bf16.msra.mxu3 %v1361_v41 }
 0x136   : > { %v678_v42 = vpop.f32.mrf.mxu1 }
 0x137   : > { %v679_v44 = vadd.f32 %v1563_v43, %v678_v42 }
 0x139   : > { %v734_v46 = vmul.f32 0.01, %v679_v44  ;;  %vm718_vm0 = vcmp.ge.f32.partialorder %v679_v44, 0.0 }
 0x13b   : > { %v750_v48 = vsel %vm718_vm0, %v679_v44, %v734_v46 }
 0x13e   : > { %v680_v45 = vpop.f32.mrf.mxu1 }
 0x13f   : > { %v681_v25 = vadd.f32 %v1563_v43, %v680_v45 }
 0x141   : > { %v735_v47 = vmul.f32 0.01, %v681_v25  ;;  %vm719_vm1 = vcmp.ge.f32.partialorder %v681_v25, 0.0 }
 0x143   : > { %v751_v49 = vsel %vm719_vm1, %v681_v25, %v735_v47  ;;  %v1360_v47 = vld [vmem:[%s1698_s8 + $0x18] sm:$0xff] }
 0x144   : > { %v766_v50 = vpack.c.bf16 %v751_v49, %v750_v48  ;;  %1019 = vmatpush.bf16.msra.mxu3 %v1360_v47  ;;  %v1359_v49 = vld [vmem:[%s1698_s8 + $0x10] sm:$0xff] }
 0x146   : > { %v683_v51 = vpop.f32.mrf.mxu1  ;;  %850 = vmatmul.bf16.vlgmr.msra.gmra.mxu2 %v766_v50 }
 0x147   : > { %v684_v52 = vadd.f32 %v1563_v43, %v683_v51 }
 0x148   : > { %1020 = vmatpush.bf16.msra.mxu3 %v1359_v49 }
 0x149   : > { %v736_v54 = vmul.f32 0.01, %v684_v52  ;;  %vm720_vm2 = vcmp.ge.f32.partialorder %v684_v52, 0.0 }
 0x14b   : > { %v752_v57 = vsel %vm720_vm2, %v684_v52, %v736_v54 }
 0x14e   : > { %v685_v53 = vpop.f32.mrf.mxu1 }
 0x14f   : > { %v686_v55 = vadd.f32 %v1563_v43, %v685_v53  ;;  %v1358_v53 = vld [vmem:[%s1698_s8 + $0x8] sm:$0xff] }
 0x150   : > { %1021 = vmatpush.bf16.msra.mxu3 %v1358_v53 }
 0x151   : > { %v737_v56 = vmul.f32 0.01, %v686_v55  ;;  %vm721_vm3 = vcmp.ge.f32.partialorder %v686_v55, 0.0 }
 0x153   : > { %v753_v58 = vsel %vm721_vm3, %v686_v55, %v737_v56 }
 0x154   : > { %v767_v59 = vpack.c.bf16 %v753_v58, %v752_v57  ;;  %v1357_v58 = vld [vmem:[%s1698_s8] sm:$0xff] }
 0x155   : > { %1022 = vmatpush.bf16.msra.mxu3 %v1357_v58 }
 0x156   : > { %v688_v60 = vpop.f32.mrf.mxu1  ;;  %855 = vmatmul.bf16.gmra.mxu2 %v767_v59 }
 0x157   : > { %v689_v61 = vadd.f32 %v1563_v43, %v688_v60 }
 0x159   : > { %v738_v63 = vmul.f32 0.01, %v689_v61  ;;  %vm722_vm4 = vcmp.ge.f32.partialorder %v689_v61, 0.0 }
 0x15b   : > { %v754_v2 = vsel %vm722_vm4, %v689_v61, %v738_v63 }
 0x15e   : > { %v690_v62 = vpop.f32.mrf.mxu1 }
 0x15f   : > { %v691_v0 = vadd.f32 %v1563_v43, %v690_v62 }
 0x161   : > { %v739_v1 = vmul.f32 0.01, %v691_v0  ;;  %vm723_vm5 = vcmp.ge.f32.partialorder %v691_v0, 0.0 }
 0x163   : > { %v755_v3 = vsel %vm723_vm5, %v691_v0, %v739_v1 }
 0x164   : > { %v768_v4 = vpack.c.bf16 %v755_v3, %v754_v2 }
 0x166   : > { %v693_v5 = vpop.f32.mrf.mxu1  ;;  %860 = vmatmul.bf16.gmra.mxu2 %v768_v4 }
 0x167   : > { %v694_v6 = vadd.f32 %v1563_v43, %v693_v5 }
 0x169   : > { %v740_v8 = vmul.f32 0.01, %v694_v6  ;;  %vm724_vm6 = vcmp.ge.f32.partialorder %v694_v6, 0.0 }
 0x16b   : > { %v756_v11 = vsel %vm724_vm6, %v694_v6, %v740_v8 }
 0x16e   : > { %v695_v7 = vpop.f32.mrf.mxu1 }
 0x16f   : > { %v696_v9 = vadd.f32 %v1563_v43, %v695_v7 }
 0x171   : > { %v741_v10 = vmul.f32 0.01, %v696_v9  ;;  %vm725_vm7 = vcmp.ge.f32.partialorder %v696_v9, 0.0 }
 0x173   : > { %v757_v12 = vsel %vm725_vm7, %v696_v9, %v741_v10 }
 0x174   : > { %v769_v13 = vpack.c.bf16 %v757_v12, %v756_v11 }
 0x176   : > { %v698_v14 = vpop.f32.mrf.mxu1  ;;  %865 = vmatmul.bf16.gmra.mxu2 %v769_v13 }
 0x177   : > { %v699_v15 = vadd.f32 %v1563_v43, %v698_v14 }
 0x179   : > { %v742_v17 = vmul.f32 0.01, %v699_v15  ;;  %vm726_vm8 = vcmp.ge.f32.partialorder %v699_v15, 0.0 }
 0x17b   : > { %v758_v20 = vsel %vm726_vm8, %v699_v15, %v742_v17 }
 0x17e   : > { %v700_v16 = vpop.f32.mrf.mxu1 }
 0x17f   : > { %v701_v18 = vadd.f32 %v1563_v43, %v700_v16 }
 0x181   : > { %v743_v19 = vmul.f32 0.01, %v701_v18  ;;  %vm727_vm9 = vcmp.ge.f32.partialorder %v701_v18, 0.0 }
 0x183   : > { %v759_v21 = vsel %vm727_vm9, %v701_v18, %v743_v19 }
 0x184   : > { %v770_v22 = vpack.c.bf16 %v759_v21, %v758_v20 }
 0x186   : > { %v703_v23 = vpop.f32.mrf.mxu1  ;;  %870 = vmatmul.bf16.gmra.mxu2 %v770_v22 }
 0x187   : > { %v704_v24 = vadd.f32 %v1563_v43, %v703_v23 }
 0x189   : > { %v744_v27 = vmul.f32 0.01, %v704_v24  ;;  %vm728_vm10 = vcmp.ge.f32.partialorder %v704_v24, 0.0 }
 0x18b   : > { %v760_v30 = vsel %vm728_vm10, %v704_v24, %v744_v27 }
 0x18e   : > { %v705_v26 = vpop.f32.mrf.mxu1 }
 0x18f   : > { %v706_v28 = vadd.f32 %v1563_v43, %v705_v26 }
 0x191   : > { %v745_v29 = vmul.f32 0.01, %v706_v28  ;;  %vm729_vm11 = vcmp.ge.f32.partialorder %v706_v28, 0.0 }
 0x193   : > { %v761_v31 = vsel %vm729_vm11, %v706_v28, %v745_v29 }
 0x194   : > { %v771_v32 = vpack.c.bf16 %v761_v31, %v760_v30 }
 0x196   : > { %v708_v33 = vpop.f32.mrf.mxu1  ;;  %875 = vmatmul.bf16.gmra.mxu2 %v771_v32 }
 0x197   : > { %v709_v36 = vadd.f32 %v1563_v43, %v708_v33 }
 0x199   : > { %v746_v39 = vmul.f32 0.01, %v709_v36  ;;  %vm730_vm12 = vcmp.ge.f32.partialorder %v709_v36, 0.0 }
 0x19b   : > { %v762_v44 = vsel %vm730_vm12, %v709_v36, %v746_v39 }
 0x19e   : > { %v710_v38 = vpop.f32.mrf.mxu1 }
 0x19f   : > { %v711_v40 = vadd.f32 %v1563_v43, %v710_v38 }
 0x1a1   : > { %v747_v42 = vmul.f32 0.01, %v711_v40  ;;  %vm731_vm13 = vcmp.ge.f32.partialorder %v711_v40, 0.0 }
 0x1a3   : > { %v763_v45 = vsel %vm731_vm13, %v711_v40, %v747_v42 }
 0x1a4   : > { %v772_v46 = vpack.c.bf16 %v763_v45, %v762_v44 }
 0x1a6   : > { %v713_v25 = vpop.f32.mrf.mxu1  ;;  %880 = vmatmul.bf16.gmra.mxu2 %v772_v46 }
 0x1a7   : > { %v714_v48 = vadd.f32 %v1563_v43, %v713_v25 }
 0x1a9   : > { %v748_v51 = vmul.f32 0.01, %v714_v48  ;;  %vm732_vm14 = vcmp.ge.f32.partialorder %v714_v48, 0.0 }
 0x1ab   : > { %v764_v55 = vsel %vm732_vm14, %v714_v48, %v748_v51 }
 0x1ae   : > { %v715_v50 = vpop.f32.mrf.mxu1 }
 0x1af   : > { %v716_v52 = vadd.f32 %v1563_v43, %v715_v50  ;;  %v1608_v43 = vld [vmem:[%s1697_s7] ss:$0 sm:$0xff] }
 0x1b1   : > { %v749_v54 = vmul.f32 0.01, %v716_v52  ;;  %vm733_vm15 = vcmp.ge.f32.partialorder %v716_v52, 0.0 }
 0x1b3   : > { %v765_v56 = vsel %vm733_vm15, %v716_v52, %v749_v54 }
 0x1b4   : > { %v773_v57 = vpack.c.bf16 %v765_v56, %v764_v55 }
 0x1b6   : > { %885 = vmatmul.bf16.gmra.mxu2 %v773_v57 }
 0x1c9   : > { %v851_v59 = vpop.f32.mrf.mxu2 }
 0x1ca   : > { %v852_v60 = vadd.f32 %v1608_v43, %v851_v59 }
 0x1cc   : > { %v907_v62 = vmul.f32 0.01, %v852_v60  ;;  %vm891_vm0 = vcmp.ge.f32.partialorder %v852_v60, 0.0 }
 0x1ce   : > { %v923_v1 = vsel %vm891_vm0, %v852_v60, %v907_v62 }
 0x1d1   : > { %v853_v61 = vpop.f32.mrf.mxu2 }
 0x1d2   : > { %v854_v63 = vadd.f32 %v1608_v43, %v853_v61 }
 0x1d4   : > { %v908_v0 = vmul.f32 0.01, %v854_v63  ;;  %vm892_vm1 = vcmp.ge.f32.partialorder %v854_v63, 0.0 }
 0x1d6   : > { %v924_v2 = vsel %vm892_vm1, %v854_v63, %v908_v0 }
 0x1d7   : > { %v939_v3 = vpack.c.bf16 %v924_v2, %v923_v1 }
 0x1d9   : > { %v856_v4 = vpop.f32.mrf.mxu2  ;;  %1023 = vmatmul.bf16.vlgmr.msra.gmra.mxu3 %v939_v3 }
 0x1da   : > { %v857_v5 = vadd.f32 %v1608_v43, %v856_v4  ;;  %v1629_v4 = vld [vmem:[%s1699_s9] ss:$0 sm:$0xff] }
 0x1dc   : > { %v909_v7 = vmul.f32 0.01, %v857_v5  ;;  %vm893_vm2 = vcmp.ge.f32.partialorder %v857_v5, 0.0 }
 0x1de   : > { %v925_v10 = vsel %vm893_vm2, %v857_v5, %v909_v7 }
 0x1e1   : > { %v858_v6 = vpop.f32.mrf.mxu2 }
 0x1e2   : > { %v859_v8 = vadd.f32 %v1608_v43, %v858_v6  ;;  %v1632_v6 = vstv %s1064_s14 }
 0x1e4   : > { %v910_v9 = vmul.f32 0.01, %v859_v8  ;;  %vm894_vm3 = vcmp.ge.f32.partialorder %v859_v8, 0.0 }
 0x1e6   : > { %v926_v11 = vsel %vm894_vm3, %v859_v8, %v910_v9 }
 0x1e7   : > { %v940_v12 = vpack.c.bf16 %v926_v11, %v925_v10 }
 0x1e9   : > { %v861_v13 = vpop.f32.mrf.mxu2  ;;  %1028 = vmatmul.bf16.gmra.mxu3 %v940_v12 }
 0x1ea   : > { %v862_v14 = vadd.f32 %v1608_v43, %v861_v13 }
 0x1ec   : > { %v911_v16 = vmul.f32 0.01, %v862_v14  ;;  %vm895_vm4 = vcmp.ge.f32.partialorder %v862_v14, 0.0 }
 0x1ee   : > { %v927_v19 = vsel %vm895_vm4, %v862_v14, %v911_v16 }
 0x1f1   : > { %v863_v15 = vpop.f32.mrf.mxu2 }
 0x1f2   : > { %v864_v17 = vadd.f32 %v1608_v43, %v863_v15 }
 0x1f4   : > { %v912_v18 = vmul.f32 0.01, %v864_v17  ;;  %vm896_vm5 = vcmp.ge.f32.partialorder %v864_v17, 0.0 }
 0x1f6   : > { %v928_v20 = vsel %vm896_vm5, %v864_v17, %v912_v18 }
 0x1f7   : > { %v941_v21 = vpack.c.bf16 %v928_v20, %v927_v19 }
 0x1f9   : > { %v866_v22 = vpop.f32.mrf.mxu2  ;;  %1033 = vmatmul.bf16.gmra.mxu3 %v941_v21 }
 0x1fa   : > { %v867_v23 = vadd.f32 %v1608_v43, %v866_v22 }
 0x1fc   : > { %v913_v26 = vmul.f32 0.01, %v867_v23  ;;  %vm897_vm6 = vcmp.ge.f32.partialorder %v867_v23, 0.0 }
 0x1fe   : > { %v929_v29 = vsel %vm897_vm6, %v867_v23, %v913_v26 }
 0x201   : > { %v868_v24 = vpop.f32.mrf.mxu2 }
 0x202   : > { %v869_v27 = vadd.f32 %v1608_v43, %v868_v24 }
 0x204   : > { %v914_v28 = vmul.f32 0.01, %v869_v27  ;;  %vm898_vm7 = vcmp.ge.f32.partialorder %v869_v27, 0.0 }
 0x206   : > { %v930_v30 = vsel %vm898_vm7, %v869_v27, %v914_v28 }
 0x207   : > { %v942_v31 = vpack.c.bf16 %v930_v30, %v929_v29 }
 0x209   : > { %v871_v32 = vpop.f32.mrf.mxu2  ;;  %1038 = vmatmul.bf16.gmra.mxu3 %v942_v31 }
 0x20a   : > { %v872_v33 = vadd.f32 %v1608_v43, %v871_v32 }
 0x20c   : > { %v915_v35 = vmul.f32 0.01, %v872_v33  ;;  %vm899_vm8 = vcmp.ge.f32.partialorder %v872_v33, 0.0 }
 0x20e   : > { %v931_v38 = vsel %vm899_vm8, %v872_v33, %v915_v35 }
 0x211   : > { %v873_v34 = vpop.f32.mrf.mxu2 }
 0x212   : > { %v874_v36 = vadd.f32 %v1608_v43, %v873_v34 }
 0x214   : > { %v916_v37 = vmul.f32 0.01, %v874_v36  ;;  %vm900_vm9 = vcmp.ge.f32.partialorder %v874_v36, 0.0 }
 0x216   : > { %v932_v39 = vsel %vm900_vm9, %v874_v36, %v916_v37 }
 0x217   : > { %v943_v40 = vpack.c.bf16 %v932_v39, %v931_v38 }
 0x219   : > { %v876_v41 = vpop.f32.mrf.mxu2  ;;  %1043 = vmatmul.bf16.gmra.mxu3 %v943_v40 }
 0x21a   : > { %v877_v42 = vadd.f32 %v1608_v43, %v876_v41 }
 0x21c   : > { %v917_v45 = vmul.f32 0.01, %v877_v42  ;;  %vm901_vm10 = vcmp.ge.f32.partialorder %v877_v42, 0.0 }
 0x21e   : > { %v933_v47 = vsel %vm901_vm10, %v877_v42, %v917_v45 }
 0x221   : > { %v878_v44 = vpop.f32.mrf.mxu2 }
 0x222   : > { %v879_v46 = vadd.f32 %v1608_v43, %v878_v44 }
 0x224   : > { %v918_v25 = vmul.f32 0.01, %v879_v46  ;;  %vm902_vm11 = vcmp.ge.f32.partialorder %v879_v46, 0.0 }
 0x226   : > { %v934_v48 = vsel %vm902_vm11, %v879_v46, %v918_v25 }
 0x227   : > { %v944_v49 = vpack.c.bf16 %v934_v48, %v933_v47 }
 0x229   : > { %v881_v50 = vpop.f32.mrf.mxu2  ;;  %1048 = vmatmul.bf16.gmra.mxu3 %v944_v49 }
 0x22a   : > { %v882_v51 = vadd.f32 %v1608_v43, %v881_v50 }
 0x22c   : > { %v919_v53 = vmul.f32 0.01, %v882_v51  ;;  %vm903_vm12 = vcmp.ge.f32.partialorder %v882_v51, 0.0 }
 0x22e   : > { %v935_v56 = vsel %vm903_vm12, %v882_v51, %v919_v53 }
 0x231   : > { %v883_v52 = vpop.f32.mrf.mxu2 }
 0x232   : > { %v884_v54 = vadd.f32 %v1608_v43, %v883_v52 }
 0x234   : > { %v920_v55 = vmul.f32 0.01, %v884_v54  ;;  %vm904_vm13 = vcmp.ge.f32.partialorder %v884_v54, 0.0 }
 0x236   : > { %v936_v57 = vsel %vm904_vm13, %v884_v54, %v920_v55 }
 0x237   : > { %v945_v58 = vpack.c.bf16 %v936_v57, %v935_v56 }
 0x239   : > { %v886_v59 = vpop.f32.mrf.mxu2  ;;  %1053 = vmatmul.bf16.gmra.mxu3 %v945_v58 }
 0x23a   : > { %v887_v60 = vadd.f32 %v1608_v43, %v886_v59 }
 0x23c   : > { %v921_v62 = vmul.f32 0.01, %v887_v60  ;;  %vm905_vm14 = vcmp.ge.f32.partialorder %v887_v60, 0.0 }
 0x23e   : > { %v937_v1 = vsel %vm905_vm14, %v887_v60, %v921_v62 }
 0x241   : > { %v888_v61 = vpop.f32.mrf.mxu2 }
 0x242   : > { %v889_v63 = vadd.f32 %v1608_v43, %v888_v61 }
 0x244   : > { %v922_v0 = vmul.f32 0.01, %v889_v63  ;;  %vm906_vm15 = vcmp.ge.f32.partialorder %v889_v63, 0.0 }
 0x246   : > { %v938_v2 = vsel %vm906_vm15, %v889_v63, %v922_v0 }
 0x247   : > { %v946_v3 = vpack.c.bf16 %v938_v2, %v937_v1 }
 0x249   : > { %1058 = vmatmul.bf16.gmra.mxu3 %v946_v3 }
 0x25c   : > { %v1024_v5 = vpop.f32.mrf.mxu3 }
 0x25d   : > { %v1025_v7 = vadd.f32 %v1629_v4, %v1024_v5 }
 0x25f   : > { %v1066_v43 = vmul.f32 %v1632_v6, %v1025_v7 }
 0x261   : > { %1082 = vst [vmem:[%s1638_s20] sm:$0xff] %v1066_v43 }
 0x264   : > { %v1026_v8 = vpop.f32.mrf.mxu3 }
 0x265   : > { %v1027_v9 = vadd.f32 %v1629_v4, %v1026_v8 }
 0x267   : > { %v1067_v10 = vmul.f32 %v1632_v6, %v1027_v9 }
 0x269   : > { %1083 = vst [vmem:[%s1638_s20 + $0x8] sm:$0xff] %v1067_v10 }
 0x26c   : > { %v1029_v11 = vpop.f32.mrf.mxu3 }
 0x26d   : > { %v1030_v12 = vadd.f32 %v1629_v4, %v1029_v11 }
 0x26f   : > { %v1068_v13 = vmul.f32 %v1632_v6, %v1030_v12 }
 0x271   : > { %1084 = vst [vmem:[%s1638_s20 + $0x10] sm:$0xff] %v1068_v13 }
 0x274   : > { %v1031_v14 = vpop.f32.mrf.mxu3 }
 0x275   : > { %v1032_v15 = vadd.f32 %v1629_v4, %v1031_v14 }
 0x277   : > { %v1069_v16 = vmul.f32 %v1632_v6, %v1032_v15 }
 0x279   : > { %1085 = vst [vmem:[%s1638_s20 + $0x18] sm:$0xff] %v1069_v16 }
 0x27c   : > { %v1034_v17 = vpop.f32.mrf.mxu3 }
 0x27d   : > { %v1035_v18 = vadd.f32 %v1629_v4, %v1034_v17 }
 0x27f   : > { %v1070_v19 = vmul.f32 %v1632_v6, %v1035_v18 }
 0x281   : > { %1086 = vst [vmem:[%s1638_s20 + $0x20] sm:$0xff] %v1070_v19 }
 0x284   : > { %v1036_v20 = vpop.f32.mrf.mxu3 }
 0x285   : > { %v1037_v21 = vadd.f32 %v1629_v4, %v1036_v20 }
 0x287   : > { %v1071_v22 = vmul.f32 %v1632_v6, %v1037_v21 }
 0x289   : > { %1087 = vst [vmem:[%s1638_s20 + $0x28] sm:$0xff] %v1071_v22 }
 0x28c   : > { %v1039_v23 = vpop.f32.mrf.mxu3 }
 0x28d   : > { %v1040_v24 = vadd.f32 %v1629_v4, %v1039_v23 }
 0x28f   : > { %v1072_v26 = vmul.f32 %v1632_v6, %v1040_v24 }
 0x291   : > { %1088 = vst [vmem:[%s1638_s20 + $0x30] sm:$0xff] %v1072_v26 }
 0x294   : > { %v1041_v27 = vpop.f32.mrf.mxu3 }
 0x295   : > { %v1042_v28 = vadd.f32 %v1629_v4, %v1041_v27 }
 0x297   : > { %v1073_v29 = vmul.f32 %v1632_v6, %v1042_v28 }
 0x299   : > { %1089 = vst [vmem:[%s1638_s20 + $0x38] sm:$0xff] %v1073_v29 }
 0x29c   : > { %v1044_v30 = vpop.f32.mrf.mxu3 }
 0x29d   : > { %v1045_v31 = vadd.f32 %v1629_v4, %v1044_v30 }
 0x29f   : > { %v1074_v32 = vmul.f32 %v1632_v6, %v1045_v31 }
 0x2a1   : > { %1090 = vst [vmem:[%s1638_s20 + $0x40] sm:$0xff] %v1074_v32 }
 0x2a4   : > { %v1046_v33 = vpop.f32.mrf.mxu3 }
 0x2a5   : > { %v1047_v34 = vadd.f32 %v1629_v4, %v1046_v33 }
 0x2a7   : > { %v1075_v35 = vmul.f32 %v1632_v6, %v1047_v34 }
 0x2a9   : > { %1091 = vst [vmem:[%s1638_s20 + $0x48] sm:$0xff] %v1075_v35 }
 0x2ac   : > { %v1049_v36 = vpop.f32.mrf.mxu3 }
 0x2ad   : > { %v1050_v37 = vadd.f32 %v1629_v4, %v1049_v36 }
 0x2af   : > { %v1076_v38 = vmul.f32 %v1632_v6, %v1050_v37 }
 0x2b1   : > { %1092 = vst [vmem:[%s1638_s20 + $0x50] sm:$0xff] %v1076_v38 }
 0x2b4   : > { %v1051_v39 = vpop.f32.mrf.mxu3 }
 0x2b5   : > { %v1052_v40 = vadd.f32 %v1629_v4, %v1051_v39 }
 0x2b7   : > { %v1077_v41 = vmul.f32 %v1632_v6, %v1052_v40 }
 0x2b9   : > { %1093 = vst [vmem:[%s1638_s20 + $0x58] sm:$0xff] %v1077_v41 }
 0x2bc   : > { %v1054_v42 = vpop.f32.mrf.mxu3 }
 0x2bd   : > { %v1055_v44 = vadd.f32 %v1629_v4, %v1054_v42 }
 0x2bf   : > { %v1078_v45 = vmul.f32 %v1632_v6, %v1055_v44 }
 0x2c1   : > { %1094 = vst [vmem:[%s1638_s20 + $0x60] sm:$0xff] %v1078_v45 }
 0x2c4   : > { %v1056_v46 = vpop.f32.mrf.mxu3 }
 0x2c5   : > { %v1057_v25 = vadd.f32 %v1629_v4, %v1056_v46 }
 0x2c7   : > { %v1079_v47 = vmul.f32 %v1632_v6, %v1057_v25 }
 0x2c9   : > { %1095 = vst [vmem:[%s1638_s20 + $0x68] sm:$0xff] %v1079_v47 }
 0x2cc   : > { %v1059_v48 = vpop.f32.mrf.mxu3 }
 0x2cd   : > { %v1060_v49 = vadd.f32 %v1629_v4, %v1059_v48 }
 0x2cf   : > { %v1080_v50 = vmul.f32 %v1632_v6, %v1060_v49 }
 0x2d1   : > { %1096 = vst [vmem:[%s1638_s20 + $0x70] sm:$0xff] %v1080_v50 }
 0x2d4   : > { %v1061_v51 = vpop.f32.mrf.mxu3 }
 0x2d5   : > { %v1062_v52 = vadd.f32 %v1629_v4, %v1061_v51 }
 0x2d7   : > { %v1081_v53 = vmul.f32 %v1632_v6, %v1062_v52 }
 0x2d9   : > { %1097 = vst [vmem:[%s1638_s20 + $0x78] sm:$0xff] %v1081_v53 }
 0x2da PF: > { %s21_s15 = sadd.s32 1, %s1383_s15  }
 0x2db   : > { %p18_p4 = scmp.ge.s32.totalorder %s21_s15, 4  }
 0x2dd   :  { %20 = sbr.rel (!%p18_p4) target bundleno = 2 (0x2), region = 90 }

</bundles_post_ra>
